<compile_context>
chip_gen: v7x
topology: tpu7x:2x2x1
jax: 0.10.0
libtpu: 0.0.40
codegen_flags: <defaults>
</compile_context>

<pallas_src>
from typing import NamedTuple

import jax
import jax.numpy as jnp
from jax.experimental import pallas as pl
from jax.experimental.pallas import tpu as pltpu

LANE = 128          # lane width: last dim of every block padded to this
BATCH_ALIGN = 16    # bf16 sublane packing: batch tiles are multiples of 16


def _round_up(n, m):
    return ((n + m - 1) // m) * m


def _cdiv(a, b):
    return -(-a // b)


def _pad2d(a, rows, cols):
    r, c = a.shape
    if (r, c) == (rows, cols):
        return a
    return jnp.pad(a, ((0, rows - r), (0, cols - c)))


def _vmem_budget_bytes():
    """Per-generation usable VMEM budget (physical capacity minus headroom)."""
    cap = 0
    try:
        cap = int(pltpu.get_tpu_info().vmem_capacity_bytes)
    except Exception:
        cap = 0
    if cap <= 0:
        kind = getattr(jax.devices()[0], "device_kind", "").lower()
        cap = (64 << 20) if "v7" in kind else (128 << 20)   # v7x: 64 MiB, else 128 MiB
    # ~20% headroom for Mosaic internal scratch / pipeline bookkeeping:
    # ~51 MiB budget on v7x, ~102 MiB on v5e/v6e.
    return int(cap * 0.8)


# ----------------------------------------------------------------------------
# Kernel
# ----------------------------------------------------------------------------
def mlp_kernel(x_ref,
               w1_ref, b1_ref,
               w2_ref, b2_ref,
               w3_ref, b3_ref,
               w4_ref, b4_ref,
               o_ref):
    # fc1 + ReLU (+ dropout1 == identity at inference).
    # bf16 x bf16 inputs, f32 MXU accumulation, f32 bias add.
    h = jnp.dot(x_ref[...], w1_ref[...],
                preferred_element_type=jnp.float32) + b1_ref[...]
    h = jnp.maximum(h, 0.0)

    # fc2 + ReLU (+ dropout2 == identity at inference)
    h = jnp.dot(h.astype(jnp.bfloat16), w2_ref[...],
                preferred_element_type=jnp.float32) + b2_ref[...]
    h = jnp.maximum(h, 0.0)

    # fc3 + ReLU (+ dropout3 == identity at inference)
    h = jnp.dot(h.astype(jnp.bfloat16), w3_ref[...],
                preferred_element_type=jnp.float32) + b3_ref[...]
    h = jnp.maximum(h, 0.0)

    # fc4 (no activation); lane-dense f32 store (nc_p is a multiple of 128).
    o_ref[...] = (jnp.dot(h.astype(jnp.bfloat16), w4_ref[...],
                          preferred_element_type=jnp.float32)
                  + b4_ref[...]).astype(o_ref.dtype)


# ----------------------------------------------------------------------------
# Parameter preparation (done ONCE, outside the per-call forward path)
# ----------------------------------------------------------------------------
class MLPDims(NamedTuple):
    in_size: int
    hidden: int
    num_classes: int
    in_p: int
    h_p: int
    nc_p: int


def prepare_params(params):
    """Pad feature dims to multiples of 128 and cast weights to bf16, once."""
    in_size, hidden = params["w1"].shape
    num_classes = params["w4"].shape[1]
    in_p = _round_up(in_size, LANE)
    h_p = _round_up(hidden, LANE)
    nc_p = _round_up(num_classes, LANE)

    # Zero padding is numerically exact for x @ W + b through ReLU when the
    # padded rows/cols of W and padded cols of b are zero.
    prepped = dict(
        w1=_pad2d(params["w1"], in_p, h_p).astype(jnp.bfloat16),
        b1=_pad2d(params["b1"], 1, h_p).astype(jnp.float32),
        w2=_pad2d(params["w2"], h_p, h_p).astype(jnp.bfloat16),
        b2=_pad2d(params["b2"], 1, h_p).astype(jnp.float32),
        w3=_pad2d(params["w3"], h_p, h_p).astype(jnp.bfloat16),
        b3=_pad2d(params["b3"], 1, h_p).astype(jnp.float32),
        w4=_pad2d(params["w4"], h_p, nc_p).astype(jnp.bfloat16),
        b4=_pad2d(params["b4"], 1, nc_p).astype(jnp.float32),
    )
    dims = MLPDims(in_size, hidden, num_classes, in_p, h_p, nc_p)
    return prepped, dims


# ----------------------------------------------------------------------------
# Forward
# ----------------------------------------------------------------------------
def simple_mlp_forward(x, prepared, *, max_tile_b=2048):
    """x: [B, input_size] f32.  prepared: output of prepare_params()."""
    p, d = prepared
    B, in_size = x.shape
    assert in_size == d.in_size, "input feature size mismatch"

    budget = _vmem_budget_bytes()

    # Resident weight/bias footprint.  Conservatively charge 2x (Pallas may
    # double-buffer even grid-invariant operands).
    weight_bytes = 2 * (d.in_p * d.h_p + 2 * d.h_p * d.h_p + d.h_p * d.nc_p)  # bf16
    bias_bytes = 4 * (3 * d.h_p + d.nc_p)                                      # f32
    resident = 2 * (weight_bytes + bias_bytes)
    headroom = 4 << 20
    if resident + headroom >= budget:
        raise NotImplementedError(
            "Resident-weight MLP kernel does not fit the VMEM budget "
            f"({resident} B of weights vs {budget} B); a per-layer K/N-tiled "
            "pipeline (pltpu.emit_pipeline) is required for this hidden size.")

    # Per-batch-row bytes: double-buffered bf16 x tile, double-buffered f32
    # out tile, plus live f32 hidden + bf16 recast intermediates in the body.
    per_row = 2 * (2 * d.in_p) + 2 * (4 * d.nc_p) + 3 * 4 * d.h_p

    b_round = _round_up(B, BATCH_ALIGN)
    tile_b = (budget - resident - headroom) // per_row
    tile_b = min(tile_b, max_tile_b, b_round)
    tile_b = max(BATCH_ALIGN, (tile_b // BATCH_ALIGN) * BATCH_ALIGN)
    # Prefer >= 2 grid steps when the batch allows it so the "parallel" axis
    # can shard across v7x's 2 TensorCores (no-op on single-core v5e/v6e).
    if tile_b >= b_round and b_round > BATCH_ALIGN:
        tile_b = _round_up(_cdiv(b_round, 2), BATCH_ALIGN)

    b_p = _round_up(b_round, tile_b)
    grid = (b_p // tile_b,)

    # Per-call: pad x only (skip if already aligned), cast to bf16.
    x_p = x if x.shape == (b_p, d.in_p) else _pad2d(x, b_p, d.in_p)
    x_p = x_p.astype(jnp.bfloat16)

    def resident_spec(shape):
        # Same block index every grid step -> stays VMEM-resident.
        return pl.BlockSpec(shape, lambda i: (0, 0))

    x_spec = pl.BlockSpec((tile_b, d.in_p), lambda i: (i, 0))
    out_spec = pl.BlockSpec((tile_b, d.nc_p), lambda i: (i, 0))

    in_specs = [
        x_spec,
        resident_spec((d.in_p, d.h_p)), resident_spec((1, d.h_p)),
        resident_spec((d.h_p, d.h_p)), resident_spec((1, d.h_p)),
        resident_spec((d.h_p, d.h_p)), resident_spec((1, d.h_p)),
        resident_spec((d.h_p, d.nc_p)), resident_spec((1, d.nc_p)),
    ]

    # Advisory cost estimate for XLA's scheduler.
    flops = 2 * b_p * (d.in_p * d.h_p + 2 * d.h_p * d.h_p + d.h_p * d.nc_p)
    bytes_accessed = (2 * b_p * d.in_p                    # x (bf16)
                      + weight_bytes + bias_bytes         # params
                      + 4 * b_p * d.nc_p)                 # out (f32)
    cost = pl.CostEstimate(flops=flops, transcendentals=0,
                           bytes_accessed=bytes_accessed)

    out_padded = pl.pallas_call(
        mlp_kernel,
        out_shape=jax.ShapeDtypeStruct((b_p, d.nc_p), jnp.float32),
        grid=grid,
        in_specs=in_specs,
        out_specs=out_spec,
        compiler_params=pltpu.CompilerParams(
            dimension_semantics=("parallel",),     # megacore on v7x
            vmem_limit_bytes=budget),
        cost_estimate=cost,
    )(x_p,
      p["w1"], p["b1"], p["w2"], p["b2"],
      p["w3"], p["b3"], p["w4"], p["b4"])

    return out_padded[:B, :d.num_classes]


# ----------------------------------------------------------------------------
# Init + references
# ----------------------------------------------------------------------------
def init_params(key, input_size, hidden_size, num_classes):
    """Deterministic init mimicking nn.Linear's uniform(-1/sqrt(fan_in), +)."""
    def linear(k, fan_in, fan_out):
        kw, kb = jax.random.split(k)
        bound = 1.0 / jnp.sqrt(fan_in)
        w = jax.random.uniform(kw, (fan_in, fan_out), jnp.float32, -bound, bound)
        b = jax.random.uniform(kb, (1, fan_out), jnp.float32, -bound, bound)
        return w, b

    k1, k2, k3, k4 = jax.random.split(key, 4)
    w1, b1 = linear(k1, input_size, hidden_size)
    w2, b2 = linear(k2, hidden_size, hidden_size)
    w3, b3 = linear(k3, hidden_size, hidden_size)
    w4, b4 = linear(k4, hidden_size, num_classes)
    return dict(w1=w1, b1=b1, w2=w2, b2=b2, w3=w3, b3=b3, w4=w4, b4=b4)


def reference_forward_f32(x, p):
    h = jnp.maximum(x @ p["w1"] + p["b1"], 0.0)
    h = jnp.maximum(h @ p["w2"] + p["b2"], 0.0)
    h = jnp.maximum(h @ p["w3"] + p["b3"], 0.0)
    return h @ p["w4"] + p["b4"]


def reference_forward_bf16(x, p):
    """Matches the kernel's bf16-inputs / f32-accumulation arithmetic."""
    def lin(h, w, b):
        return jnp.dot(h.astype(jnp.bfloat16), w.astype(jnp.bfloat16),
                       preferred_element_type=jnp.float32) + b
    h = jnp.maximum(lin(x, p["w1"], p["b1"]), 0.0)
    h = jnp.maximum(lin(h, p["w2"], p["b2"]), 0.0)
    h = jnp.maximum(lin(h, p["w3"], p["b3"]), 0.0)
    return lin(h, p["w4"], p["b4"])


if __name__ == "__main__":
    batch = 8
    input_size = 32
    hidden_size = 32
    num_classes = 16
    dropout_prob = 0.1   # nn.Dropout is identity in eval mode (inference)

    key = jax.random.PRNGKey(0)
    kx, kp = jax.random.split(key)
    x = jax.random.normal(kx, (batch, input_size), dtype=jnp.float32)
    params = init_params(kp, input_size, hidden_size, num_classes)

    prepared = prepare_params(params)          # pad + bf16-cast once (hoisted)

    out = simple_mlp_forward(x, prepared)
    out = jax.block_until_ready(out)
    assert out.shape == (batch, num_classes)

    # Tight check vs a reference using the same bf16-input / f32-accum math.
    ref_bf16 = reference_forward_bf16(x, params)
    assert jnp.allclose(out, ref_bf16, atol=2e-3, rtol=2e-3), \
        "mismatch vs bf16-matched JAX reference"

    # Sanity check vs the pure-f32 reference (bf16 rounding tolerance).
    ref_f32 = reference_forward_f32(x, params)
    assert jnp.allclose(out, ref_f32, atol=6e-2, rtol=6e-2), \
        "mismatch vs f32 JAX reference"

    print("KERNEL_OK")
</pallas_src>

<mosaic_0001>
module attributes {stable_mosaic.version = 11 : i64} {
  func.func @mlp_kernel(%arg0: i32, %arg1: memref<16x128xbf16, #tpu.memory_space<vmem>>, %arg2: memref<128x128xbf16, #tpu.memory_space<vmem>>, %arg3: memref<1x128xf32, #tpu.memory_space<vmem>>, %arg4: memref<128x128xbf16, #tpu.memory_space<vmem>>, %arg5: memref<1x128xf32, #tpu.memory_space<vmem>>, %arg6: memref<128x128xbf16, #tpu.memory_space<vmem>>, %arg7: memref<1x128xf32, #tpu.memory_space<vmem>>, %arg8: memref<128x128xbf16, #tpu.memory_space<vmem>>, %arg9: memref<1x128xf32, #tpu.memory_space<vmem>>, %arg10: memref<16x128xf32, #tpu.memory_space<vmem>>) attributes {dimension_semantics = [#tpu.dimension_semantics<parallel>], iteration_bounds = array<i64: 1>, scalar_prefetch = 0 : i64, scratch_operands = 0 : i64, tpu.core_type = #tpu.core_type<tc>, window_params = [{transform_indices = @transform_0, window_bounds = array<i64: 16, 128>}, {pipeline_mode = #tpu.pipeline_mode<synchronous>, transform_indices = @transform_1, window_bounds = array<i64: 128, 128>}, {pipeline_mode = #tpu.pipeline_mode<synchronous>, transform_indices = @transform_2, window_bounds = array<i64: 1, 128>}, {pipeline_mode = #tpu.pipeline_mode<synchronous>, transform_indices = @transform_3, window_bounds = array<i64: 128, 128>}, {pipeline_mode = #tpu.pipeline_mode<synchronous>, transform_indices = @transform_4, window_bounds = array<i64: 1, 128>}, {pipeline_mode = #tpu.pipeline_mode<synchronous>, transform_indices = @transform_5, window_bounds = array<i64: 128, 128>}, {pipeline_mode = #tpu.pipeline_mode<synchronous>, transform_indices = @transform_6, window_bounds = array<i64: 1, 128>}, {pipeline_mode = #tpu.pipeline_mode<synchronous>, transform_indices = @transform_7, window_bounds = array<i64: 128, 128>}, {pipeline_mode = #tpu.pipeline_mode<synchronous>, transform_indices = @transform_8, window_bounds = array<i64: 1, 128>}, {transform_indices = @transform_9, window_bounds = array<i64: 16, 128>}]} {
    %c0 = arith.constant 0 : index
    %c0_0 = arith.constant 0 : index
    %0 = vector.load %arg1[%c0, %c0_0] : memref<16x128xbf16, #tpu.memory_space<vmem>>, vector<16x128xbf16>
    %c0_1 = arith.constant 0 : index
    %c0_2 = arith.constant 0 : index
    %1 = vector.load %arg2[%c0_1, %c0_2] : memref<128x128xbf16, #tpu.memory_space<vmem>>, vector<128x128xbf16>
    %cst = arith.constant dense<0.000000e+00> : vector<16x128xf32>
    %2 = tpu.matmul %0, %1, %cst {dimension_numbers = #tpu.dot_dimension_numbers<[1], [0], [0], [1], [0, 0, 1, 1], [], []>} : vector<16x128xbf16>, vector<128x128xbf16>, vector<16x128xf32> -> vector<16x128xf32>
    %c0_3 = arith.constant 0 : index
    %c0_4 = arith.constant 0 : index
    %3 = vector.load %arg3[%c0_3, %c0_4] : memref<1x128xf32, #tpu.memory_space<vmem>>, vector<1x128xf32>
    %4 = vector.broadcast %3 : vector<1x128xf32> to vector<16x128xf32>
    %5 = arith.addf %2, %4 : vector<16x128xf32>
    %cst_5 = arith.constant 0.000000e+00 : f32
    %6 = vector.broadcast %cst_5 : f32 to vector<16x128xf32>
    %7 = arith.maximumf %5, %6 : vector<16x128xf32>
    %8 = arith.truncf %7 : vector<16x128xf32> to vector<16x128xbf16>
    %c0_6 = arith.constant 0 : index
    %c0_7 = arith.constant 0 : index
    %9 = vector.load %arg4[%c0_6, %c0_7] : memref<128x128xbf16, #tpu.memory_space<vmem>>, vector<128x128xbf16>
    %cst_8 = arith.constant dense<0.000000e+00> : vector<16x128xf32>
    %10 = tpu.matmul %8, %9, %cst_8 {dimension_numbers = #tpu.dot_dimension_numbers<[1], [0], [0], [1], [0, 0, 1, 1], [], []>} : vector<16x128xbf16>, vector<128x128xbf16>, vector<16x128xf32> -> vector<16x128xf32>
    %c0_9 = arith.constant 0 : index
    %c0_10 = arith.constant 0 : index
    %11 = vector.load %arg5[%c0_9, %c0_10] : memref<1x128xf32, #tpu.memory_space<vmem>>, vector<1x128xf32>
    %12 = vector.broadcast %11 : vector<1x128xf32> to vector<16x128xf32>
    %13 = arith.addf %10, %12 : vector<16x128xf32>
    %cst_11 = arith.constant 0.000000e+00 : f32
    %14 = vector.broadcast %cst_11 : f32 to vector<16x128xf32>
    %15 = arith.maximumf %13, %14 : vector<16x128xf32>
    %16 = arith.truncf %15 : vector<16x128xf32> to vector<16x128xbf16>
    %c0_12 = arith.constant 0 : index
    %c0_13 = arith.constant 0 : index
    %17 = vector.load %arg6[%c0_12, %c0_13] : memref<128x128xbf16, #tpu.memory_space<vmem>>, vector<128x128xbf16>
    %cst_14 = arith.constant dense<0.000000e+00> : vector<16x128xf32>
    %18 = tpu.matmul %16, %17, %cst_14 {dimension_numbers = #tpu.dot_dimension_numbers<[1], [0], [0], [1], [0, 0, 1, 1], [], []>} : vector<16x128xbf16>, vector<128x128xbf16>, vector<16x128xf32> -> vector<16x128xf32>
    %c0_15 = arith.constant 0 : index
    %c0_16 = arith.constant 0 : index
    %19 = vector.load %arg7[%c0_15, %c0_16] : memref<1x128xf32, #tpu.memory_space<vmem>>, vector<1x128xf32>
    %20 = vector.broadcast %19 : vector<1x128xf32> to vector<16x128xf32>
    %21 = arith.addf %18, %20 : vector<16x128xf32>
    %cst_17 = arith.constant 0.000000e+00 : f32
    %22 = vector.broadcast %cst_17 : f32 to vector<16x128xf32>
    %23 = arith.maximumf %21, %22 : vector<16x128xf32>
    %24 = arith.truncf %23 : vector<16x128xf32> to vector<16x128xbf16>
    %c0_18 = arith.constant 0 : index
    %c0_19 = arith.constant 0 : index
    %25 = vector.load %arg8[%c0_18, %c0_19] : memref<128x128xbf16, #tpu.memory_space<vmem>>, vector<128x128xbf16>
    %cst_20 = arith.constant dense<0.000000e+00> : vector<16x128xf32>
    %26 = tpu.matmul %24, %25, %cst_20 {dimension_numbers = #tpu.dot_dimension_numbers<[1], [0], [0], [1], [0, 0, 1, 1], [], []>} : vector<16x128xbf16>, vector<128x128xbf16>, vector<16x128xf32> -> vector<16x128xf32>
    %c0_21 = arith.constant 0 : index
    %c0_22 = arith.constant 0 : index
    %27 = vector.load %arg9[%c0_21, %c0_22] : memref<1x128xf32, #tpu.memory_space<vmem>>, vector<1x128xf32>
    %28 = vector.broadcast %27 : vector<1x128xf32> to vector<16x128xf32>
    %29 = arith.addf %26, %28 : vector<16x128xf32>
    %c0_23 = arith.constant 0 : index
    %c0_24 = arith.constant 0 : index
    %30 = vector.load %arg10[%c0_23, %c0_24] : memref<16x128xf32, #tpu.memory_space<vmem>>, vector<16x128xf32>
    tpu.vector_store %arg10[%c0_23, %c0_24], %29 {strides = array<i32>} : memref<16x128xf32, #tpu.memory_space<vmem>>, vector<16x128xf32>,
    return
  }
  func.func @transform_0(%arg0: i32) -> (i32, i32) {
    %c0_i32 = arith.constant 0 : i32
    %c0_i32_0 = arith.constant 0 : i32
    return %arg0, %c0_i32 : i32, i32
  }
  func.func @transform_1(%arg0: i32) -> (i32, i32) {
    %c0_i32 = arith.constant 0 : i32
    %c0_i32_0 = arith.constant 0 : i32
    %c0_i32_1 = arith.constant 0 : i32
    return %c0_i32, %c0_i32_0 : i32, i32
  }
  func.func @transform_2(%arg0: i32) -> (i32, i32) {
    %c0_i32 = arith.constant 0 : i32
    %c0_i32_0 = arith.constant 0 : i32
    %c0_i32_1 = arith.constant 0 : i32
    return %c0_i32, %c0_i32_0 : i32, i32
  }
  func.func @transform_3(%arg0: i32) -> (i32, i32) {
    %c0_i32 = arith.constant 0 : i32
    %c0_i32_0 = arith.constant 0 : i32
    %c0_i32_1 = arith.constant 0 : i32
    return %c0_i32, %c0_i32_0 : i32, i32
  }
  func.func @transform_4(%arg0: i32) -> (i32, i32) {
    %c0_i32 = arith.constant 0 : i32
    %c0_i32_0 = arith.constant 0 : i32
    %c0_i32_1 = arith.constant 0 : i32
    return %c0_i32, %c0_i32_0 : i32, i32
  }
  func.func @transform_5(%arg0: i32) -> (i32, i32) {
    %c0_i32 = arith.constant 0 : i32
    %c0_i32_0 = arith.constant 0 : i32
    %c0_i32_1 = arith.constant 0 : i32
    return %c0_i32, %c0_i32_0 : i32, i32
  }
  func.func @transform_6(%arg0: i32) -> (i32, i32) {
    %c0_i32 = arith.constant 0 : i32
    %c0_i32_0 = arith.constant 0 : i32
    %c0_i32_1 = arith.constant 0 : i32
    return %c0_i32, %c0_i32_0 : i32, i32
  }
  func.func @transform_7(%arg0: i32) -> (i32, i32) {
    %c0_i32 = arith.constant 0 : i32
    %c0_i32_0 = arith.constant 0 : i32
    %c0_i32_1 = arith.constant 0 : i32
    return %c0_i32, %c0_i32_0 : i32, i32
  }
  func.func @transform_8(%arg0: i32) -> (i32, i32) {
    %c0_i32 = arith.constant 0 : i32
    %c0_i32_0 = arith.constant 0 : i32
    %c0_i32_1 = arith.constant 0 : i32
    return %c0_i32, %c0_i32_0 : i32, i32
  }
  func.func @transform_9(%arg0: i32) -> (i32, i32) {
    %c0_i32 = arith.constant 0 : i32
    %c0_i32_0 = arith.constant 0 : i32
    return %arg0, %c0_i32 : i32, i32
  }
}

</mosaic_0001>

<bundles_post_ra>
// kernel: tpu_custom_call.1
= control target key start
LH: loop header
LB: loop body
LE: loop exit
PB: predicated region body
PF: predicated region fallthrough
CT: control target
= control target key end

     0   :  { %14 = vsyncpa [#allocation3], 0  ;;  %s1325_s0 = inlined_call_operand.hbm [shape: bf16[16,128], index: 0, kind: input, shape index: {}]   ;;  %s1326_s1 = inlined_call_operand.hbm [shape: bf16[128,128], index: 1, kind: input, shape index: {}]   ;;  %s1327_s2 = inlined_call_operand.hbm [shape: f32[1,128], index: 2, kind: input, shape index: {}]   ;;  %s1328_s3 = inlined_call_operand.hbm [shape: bf16[128,128], index: 3, kind: input, shape index: {}]   ;;  %s1329_s4 = inlined_call_operand.hbm [shape: f32[1,128], index: 4, kind: input, shape index: {}]   ;;  %s1330_s5 = inlined_call_operand.hbm [shape: bf16[128,128], index: 5, kind: input, shape index: {}]   ;;  %s1331_s6 = inlined_call_operand.hbm [shape: f32[1,128], index: 6, kind: input, shape index: {}]   ;;  %s1332_s7 = inlined_call_operand.hbm [shape: bf16[128,128], index: 7, kind: input, shape index: {}]   ;;  %s1333_s8 = inlined_call_operand.hbm [shape: f32[1,128], index: 8, kind: input, shape index: {}]   ;;  %s1334_s9 = inlined_call_operand.hbm [shape: f32[16,128], index: 9, kind: output, shape index: {}]  }
   0x1   :  { %15 = vsyncpa [#allocation6], 0 }
   0x2   :  { %16 = vsyncpa [#allocation9], 0 }
   0x3   :  { %17 = vsyncpa [#allocation12], 0 }
   0x4   :  { %18 = vsyncpa [#allocation15], 0 }
   0x5   :  { %19 = vsyncpa [#allocation4], 0  ;;  %s1070_s30 = smov [#allocation5]   ;;  %s1071_s11 = smov [#allocation8]  }
   0x6   :  { %s37_s10 = sshll.u32 %s1070_s30, 4  ;;  %s59_s12 = sshll.u32 %s1071_s11, 4  ;;  %s38_s10 = int_to_ptr.vmem [resolvable:$true] %s37_s10  ;;  %s1136_s12 = int_to_ptr.vmem [resolvable:$true] %s59_s12 }
   0x7   :  { %s838_s15 = scalar_lea.hbm %s1326_s1, 1024 }
   0x8   :  { %p839_p0 = scmp.ne.s32.totalorder %s1326_s1, %s838_s15  ;;  %p842_p1 = scmp.lt.u32.totalorder %s838_s15, %s1326_s1 }
   0xa   :  { %p844_p2 = pnand %p842_p1, %p839_p0 }
   0xc   :  { %847 = shalt.err (!%p844_p2)
}
   0xd   :  { %s848_s20 = scalar_lea.vmem %s38_s10, 1024  ;;  %p853_p4 = scmp.lt.s32.totalorder %s38_s10, %s38_s10 }
   0xe   :  { %p849_p3 = scmp.ne.s32.totalorder %s38_s10, %s848_s20  ;;  %p854_p5 = scmp.lt.s32.totalorder %s848_s20, %s848_s20 }
  0x10   :  { %p855_p6 = por %p854_p5, %p853_p4 }
  0x12   :  { %p856_p7 = pnand %p855_p6, %p849_p3 }
  0x14   :  { %859 = shalt.err (!%p856_p7)
}
  0x15   :  { %s1072_s21 = smov 64   ;;  %s1073_s22 = smov 4  }
  0x16   :  { %43 = dma.hbm_to_vmem [thread:$0]  %s1326_s1, 1024, %s38_s10, [#allocation6], %s1072_s21, %s1072_s21, %s1073_s22  }
  0x17   :  { %s860_s27 = scalar_lea.hbm %s1328_s3, 1024 }
  0x18   :  { %p861_p8 = scmp.ne.s32.totalorder %s1328_s3, %s860_s27  ;;  %p864_p9 = scmp.lt.u32.totalorder %s860_s27, %s1328_s3 }
  0x1a   :  { %p866_p10 = pnand %p864_p9, %p861_p8 }
  0x1c   :  { %869 = shalt.err (!%p866_p10)
}
  0x1d   :  { %s870_s13 = scalar_lea.vmem %s1136_s12, 1024  ;;  %p875_p12 = scmp.lt.s32.totalorder %s1136_s12, %s1136_s12 }
  0x1e   :  { %p871_p11 = scmp.ne.s32.totalorder %s1136_s12, %s870_s13  ;;  %p876_p13 = scmp.lt.s32.totalorder %s870_s13, %s870_s13 }
  0x20   :  { %p877_p0 = por %p876_p13, %p875_p12 }
  0x22   :  { %p878_p1 = pnand %p877_p0, %p871_p11 }
  0x24   :  { %881 = shalt.err (!%p878_p1)
}
  0x25   :  { %65 = dma.hbm_to_vmem [thread:$0]  %s1328_s3, 1024, %s1136_s12, [#allocation9], %s1072_s21, %s1072_s21, %s1073_s22  }
  0x26   :  { %s1074_s14 = smov [#allocation11]   ;;  %s1075_s16 = smov [#allocation14]  }
  0x27   :  { %s81_s15 = sshll.u32 %s1074_s14, 4  ;;  %s103_s17 = sshll.u32 %s1075_s16, 4  ;;  %s82_s15 = int_to_ptr.vmem [resolvable:$true] %s81_s15  ;;  %s1173_s17 = int_to_ptr.vmem [resolvable:$true] %s103_s17 }
  0x28   :  { %s882_s20 = scalar_lea.hbm %s1330_s5, 1024 }
  0x29   :  { %p883_p2 = scmp.ne.s32.totalorder %s1330_s5, %s882_s20  ;;  %p886_p3 = scmp.lt.u32.totalorder %s882_s20, %s1330_s5 }
  0x2b   :  { %p888_p4 = pnand %p886_p3, %p883_p2 }
  0x2d   :  { %891 = shalt.err (!%p888_p4)
}
  0x2e   :  { %s892_s3 = scalar_lea.vmem %s82_s15, 1024  ;;  %p897_p6 = scmp.lt.s32.totalorder %s82_s15, %s82_s15 }
  0x2f   :  { %p893_p5 = scmp.ne.s32.totalorder %s82_s15, %s892_s3  ;;  %p898_p7 = scmp.lt.s32.totalorder %s892_s3, %s892_s3 }
  0x31   :  { %p899_p8 = por %p898_p7, %p897_p6 }
  0x33   :  { %p900_p9 = pnand %p899_p8, %p893_p5 }
  0x35   :  { %903 = shalt.err (!%p900_p9)
}
  0x36   :  { %87 = dma.hbm_to_vmem [thread:$0]  %s1330_s5, 1024, %s82_s15, [#allocation12], %s1072_s21, %s1072_s21, %s1073_s22  }
  0x37   :  { %s904_s30 = scalar_lea.hbm %s1332_s7, 1024 }
  0x38   :  { %p905_p10 = scmp.ne.s32.totalorder %s1332_s7, %s904_s30  ;;  %p908_p11 = scmp.lt.u32.totalorder %s904_s30, %s1332_s7 }
  0x3a   :  { %p910_p12 = pnand %p908_p11, %p905_p10 }
  0x3c   :  { %913 = shalt.err (!%p910_p12)
}
  0x3d   :  { %s914_s14 = scalar_lea.vmem %s1173_s17, 1024  ;;  %p919_p0 = scmp.lt.s32.totalorder %s1173_s17, %s1173_s17 }
  0x3e   :  { %p915_p13 = scmp.ne.s32.totalorder %s1173_s17, %s914_s14  ;;  %p920_p1 = scmp.lt.s32.totalorder %s914_s14, %s914_s14 }
  0x40   :  { %p921_p2 = por %p920_p1, %p919_p0 }
  0x42   :  { %p922_p3 = pnand %p921_p2, %p915_p13 }
  0x44   :  { %925 = shalt.err (!%p922_p3)
}
  0x45   :  { %109 = dma.hbm_to_vmem [thread:$0]  %s1332_s7, 1024, %s1173_s17, [#allocation15], %s1072_s21, %s1072_s21, %s1073_s22  }
  0x46   :  { %s1076_s16 = smov [#allocation2]   ;;  %s1077_s19 = smov [#allocation7]  }
  0x47   :  { %s25_s18 = sshll.u32 %s1076_s16, 4  ;;  %s50_s20 = sshll.u32 %s1077_s19, 4  ;;  %s26_s18 = int_to_ptr.vmem [resolvable:$true] %s25_s18  ;;  %s51_s20 = int_to_ptr.vmem [resolvable:$true] %s50_s20 }
  0x48   :  { %s926_s25 = scalar_lea.hbm %s1325_s0, 128 }
  0x49   :  { %p927_p4 = scmp.ne.s32.totalorder %s1325_s0, %s926_s25  ;;  %p930_p5 = scmp.lt.u32.totalorder %s926_s25, %s1325_s0 }
  0x4b   :  { %p932_p6 = pnand %p930_p5, %p927_p4 }
  0x4d   :  { %935 = shalt.err (!%p932_p6)
}
  0x4e   :  { %s936_s7 = scalar_lea.vmem %s26_s18, 128  ;;  %p941_p8 = scmp.lt.s32.totalorder %s26_s18, %s26_s18 }
  0x4f   :  { %p937_p7 = scmp.ne.s32.totalorder %s26_s18, %s936_s7  ;;  %p942_p9 = scmp.lt.s32.totalorder %s936_s7, %s936_s7 }
  0x51   :  { %p943_p10 = por %p942_p9, %p941_p8 }
  0x53   :  { %p944_p11 = pnand %p943_p10, %p937_p7 }
  0x55   :  { %947 = shalt.err (!%p944_p11)
}
  0x56   :  { %31 = dma.hbm_to_vmem [thread:$0]  %s1325_s0, 128, %s26_s18, [#allocation3], %s1072_s21, %s1072_s21, %s1073_s22  }
  0x57   :  { %s948_s11 = scalar_lea.hbm %s1327_s2, 16 }
  0x58   :  { %p949_p12 = scmp.ne.s32.totalorder %s1327_s2, %s948_s11  ;;  %p952_p13 = scmp.lt.u32.totalorder %s948_s11, %s1327_s2 }
  0x5a   :  { %p954_p0 = pnand %p952_p13, %p949_p12 }
  0x5c   :  { %957 = shalt.err (!%p954_p0)
}
  0x5d   :  { %s958_s5 = scalar_lea.vmem %s51_s20, 16  ;;  %s962_s15 = scalar_lea.vmem %s51_s20, 32 }
  0x5e   :  { %p959_p1 = scmp.ne.s32.totalorder %s51_s20, %s958_s5  ;;  %p963_p2 = scmp.lt.s32.totalorder %s51_s20, %s51_s20 }
  0x5f   :  { %p964_p3 = scmp.lt.s32.totalorder %s962_s15, %s958_s5 }
  0x61   :  { %p965_p4 = por %p964_p3, %p963_p2 }
  0x63   :  { %p966_p5 = pnand %p965_p4, %p959_p1 }
  0x65   :  { %969 = shalt.err (!%p966_p5)
}
  0x66   :  { %53 = dma.hbm_to_vmem [thread:$0]  %s1327_s2, 16, %s51_s20, [#allocation6]  }
  0x67   :  { %s1078_s22 = smov [#allocation10]   ;;  %s1079_s18 = smov [#allocation13]  }
  0x68   :  { %s72_s16 = sshll.u32 %s1078_s22, 4  ;;  %s94_s19 = sshll.u32 %s1079_s18, 4  ;;  %s73_s16 = int_to_ptr.vmem [resolvable:$true] %s72_s16  ;;  %s95_s19 = int_to_ptr.vmem [resolvable:$true] %s94_s19 }
  0x69   :  { %s970_s25 = scalar_lea.hbm %s1329_s4, 16 }
  0x6a   :  { %p971_p6 = scmp.ne.s32.totalorder %s1329_s4, %s970_s25  ;;  %p974_p7 = scmp.lt.u32.totalorder %s970_s25, %s1329_s4 }
  0x6c   :  { %p976_p8 = pnand %p974_p7, %p971_p6 }
  0x6e   :  { %979 = shalt.err (!%p976_p8)
}
  0x6f   :  { %s980_s2 = scalar_lea.vmem %s73_s16, 16  ;;  %s984_s20 = scalar_lea.vmem %s73_s16, 32 }
  0x70   :  { %p981_p9 = scmp.ne.s32.totalorder %s73_s16, %s980_s2  ;;  %p985_p10 = scmp.lt.s32.totalorder %s73_s16, %s73_s16 }
  0x71   :  { %p986_p11 = scmp.lt.s32.totalorder %s984_s20, %s980_s2 }
  0x73   :  { %p987_p12 = por %p986_p11, %p985_p10 }
  0x75   :  { %p988_p13 = pnand %p987_p12, %p981_p9 }
  0x77   :  { %991 = shalt.err (!%p988_p13)
}
  0x78   :  { %75 = dma.hbm_to_vmem [thread:$0]  %s1329_s4, 16, %s73_s16, [#allocation9]  }
  0x79   :  { %s992_s30 = scalar_lea.hbm %s1331_s6, 16 }
  0x7a   :  { %p993_p0 = scmp.ne.s32.totalorder %s1331_s6, %s992_s30  ;;  %p996_p1 = scmp.lt.u32.totalorder %s992_s30, %s1331_s6 }
  0x7c   :  { %p998_p2 = pnand %p996_p1, %p993_p0 }
  0x7e   :  { %1001 = shalt.err (!%p998_p2)
}
  0x7f   :  { %s1002_s14 = scalar_lea.vmem %s95_s19, 16  ;;  %s1006_s5 = scalar_lea.vmem %s95_s19, 32 }
  0x80   :  { %p1003_p3 = scmp.ne.s32.totalorder %s95_s19, %s1002_s14  ;;  %p1007_p4 = scmp.lt.s32.totalorder %s95_s19, %s95_s19 }
  0x81   :  { %p1008_p5 = scmp.lt.s32.totalorder %s1006_s5, %s1002_s14 }
  0x83   :  { %p1009_p6 = por %p1008_p5, %p1007_p4 }
  0x85   :  { %p1010_p7 = pnand %p1009_p6, %p1003_p3 }
  0x87   :  { %1013 = shalt.err (!%p1010_p7)
}
  0x88   :  { %97 = dma.hbm_to_vmem [thread:$0]  %s1331_s6, 16, %s95_s19, [#allocation12]  }
  0x89   :  { %s1080_s0 = smov [#allocation16]   ;;  %s1014_s18 = scalar_lea.hbm %s1333_s8, 16 }
  0x8a   :  { %s116_s21 = sshll.u32 %s1080_s0, 4  ;;  %p1015_p8 = scmp.ne.s32.totalorder %s1333_s8, %s1014_s18  ;;  %s117_s21 = int_to_ptr.vmem [resolvable:$true] %s116_s21 }
  0x8b   :  { %p1018_p9 = scmp.lt.u32.totalorder %s1014_s18, %s1333_s8 }
  0x8d   :  { %p1020_p10 = pnand %p1018_p9, %p1015_p8 }
  0x8f   :  { %1023 = shalt.err (!%p1020_p10)
}
  0x90   :  { %s1024_s3 = scalar_lea.vmem %s117_s21, 16  ;;  %s1028_s6 = scalar_lea.vmem %s117_s21, 32 }
  0x91   :  { %p1025_p11 = scmp.ne.s32.totalorder %s117_s21, %s1024_s3  ;;  %p1029_p12 = scmp.lt.s32.totalorder %s117_s21, %s117_s21 }
  0x92   :  { %p1030_p13 = scmp.lt.s32.totalorder %s1028_s6, %s1024_s3 }
  0x94   :  { %p1031_p0 = por %p1030_p13, %p1029_p12 }
  0x96   :  { %p1032_p1 = pnand %p1031_p0, %p1025_p11 }
  0x98   :  { %1035 = shalt.err (!%p1032_p1)
}
  0x99   :  { %119 = dma.hbm_to_vmem [thread:$0]  %s1333_s8, 16, %s117_s21, [#allocation15]  }
  0x9a   :  { %1058 = dma.done.wait [#allocation3], 128  }
  0x9b   :  { %1059 = vsyncadd [#allocation3], 4294967168 }
  0x9c   :  { %1060 = dma.done.wait [#allocation6], 1040  }
  0x9d   :  { %1061 = vsyncadd [#allocation6], 4294966256 }
  0x9e   :  { %1062 = dma.done.wait [#allocation9], 1040  }
  0x9f   :  { %1063 = vsyncadd [#allocation9], 4294966256 }
  0xa0   :  { %1064 = dma.done.wait [#allocation12], 1040  }
  0xa1   :  { %1065 = vsyncadd [#allocation12], 4294966256 }
  0xa2   :  { %1066 = dma.done.wait [#allocation15], 1040  }
  0xa3   :  { %1067 = vsyncadd [#allocation15], 4294966256  ;;  %v1081_v0 = vmov 0.0   ;;  %vm1082_vm0 = vmmov 0   ;;  %v805_v1 = vld [vmem:[#allocation5] sm:$0xff]   ;;  %v806_v2 = vld [vmem:[#allocation5 + $0x8] sm:$0xff]  }
  0xa4   :  { %709 = vmatprep.subr.bf16.mxu0 %v1081_v0  ;;  %725 = vmatprep.mubr.msk.bf16.mxu0 %vm1082_vm0, %v1081_v0  ;;  %v807_v3 = vld [vmem:[#allocation5 + $0x10] sm:$0xff]   ;;  %v814_v4 = vld [vmem:[#allocation8] sm:$0xff]   ;;  %v808_v5 = vld [vmem:[#allocation5 + $0x18] sm:$0xff]   ;;  %s1083_s8 = smov [#allocation17]  }
  0xa5   :  { %729 = vmatprep.subr.bf16.mxu1 %v1081_v0  ;;  %745 = vmatprep.mubr.msk.bf16.mxu1 %vm1082_vm0, %v1081_v0  ;;  %v815_v6 = vld [vmem:[#allocation8 + $0x8] sm:$0xff]   ;;  %v809_v7 = vld [vmem:[#allocation5 + $0x20] sm:$0xff]   ;;  %v816_v8 = vld [vmem:[#allocation8 + $0x10] sm:$0xff]   ;;  %s620_s27 = sshll.u32 %s1083_s8, 4  ;;  %s621_s27 = int_to_ptr.vmem [resolvable:$true] %s620_s27 }
  0xa6   :  { %710 = vmatpush3.bf16.msra.mxu0 %v805_v1  ;;  %730 = vmatpush3.bf16.msra.mxu1 %v814_v4  ;;  %v810_v9 = vld [vmem:[#allocation5 + $0x28] sm:$0xff]   ;;  %v817_v10 = vld [vmem:[#allocation8 + $0x18] sm:$0xff]   ;;  %v811_v11 = vld [vmem:[#allocation5 + $0x30] sm:$0xff]   ;;  %s1036_s2 = scalar_lea.vmem %s621_s27, 256  ;;  %p1041_p3 = scmp.lt.s32.totalorder %s621_s27, %s621_s27 }
  0xa7   :  { %711 = vmatprep.subr.bf16.mxu0 %v1081_v0  ;;  %731 = vmatprep.subr.bf16.mxu1 %v1081_v0  ;;  %v818_v12 = vld [vmem:[#allocation8 + $0x20] sm:$0xff]   ;;  %v812_v13 = vld [vmem:[#allocation5 + $0x38] sm:$0xff]   ;;  %v819_v14 = vld [vmem:[#allocation8 + $0x28] sm:$0xff]   ;;  %p1037_p2 = scmp.ne.s32.totalorder %s621_s27, %s1036_s2  ;;  %p1042_p4 = scmp.lt.s32.totalorder %s1036_s2, %s1036_s2 }
  0xa8   :  { %v813_v15 = vld [vmem:[#allocation2] sm:$0xff]   ;;  %v822_v18 = vld [vmem:[#allocation11] sm:$0xff]   ;;  %v823_v19 = vld [vmem:[#allocation11 + $0x8] sm:$0xff]  }
  0xa9   :  { %v820_v16 = vld [vmem:[#allocation8 + $0x30] sm:$0xff]   ;;  %v821_v17 = vld [vmem:[#allocation8 + $0x38] sm:$0xff]   ;;  %v826_v22 = vld [vmem:[#allocation11 + $0x20] sm:$0xff]   ;;  %p1043_p5 = por %p1042_p4, %p1041_p3 }
  0xaa   :  { %712 = vmatpush3.bf16.msra.mxu0 %v806_v2  ;;  %732 = vmatpush3.bf16.msra.mxu1 %v815_v6  ;;  %v824_v20 = vld [vmem:[#allocation11 + $0x10] sm:$0xff]   ;;  %v825_v21 = vld [vmem:[#allocation11 + $0x18] sm:$0xff]   ;;  %v827_v23 = vld [vmem:[#allocation11 + $0x28] sm:$0xff]  }
  0xab   :  { %713 = vmatprep.subr.bf16.mxu0 %v1081_v0  ;;  %733 = vmatprep.subr.bf16.mxu1 %v1081_v0  ;;  %v636_v24 = vld [vmem:[#allocation7] ss:$0 sm:$0xff]  ;;  %v828_v34 = vld [vmem:[#allocation11 + $0x30] sm:$0xff]   ;;  %v830_v36 = vld [vmem:[#allocation14] sm:$0xff]   ;;  %p1044_p6 = pnand %p1043_p5, %p1037_p2 }
  0xac   :  { %v829_v35 = vld [vmem:[#allocation11 + $0x38] sm:$0xff]   ;;  %v831_v37 = vld [vmem:[#allocation14 + $0x8] sm:$0xff]   ;;  %v834_v40 = vld [vmem:[#allocation14 + $0x20] sm:$0xff]  }
  0xad   :  { %v832_v38 = vld [vmem:[#allocation14 + $0x10] sm:$0xff]   ;;  %v833_v39 = vld [vmem:[#allocation14 + $0x18] sm:$0xff]   ;;  %v835_v41 = vld [vmem:[#allocation14 + $0x28] sm:$0xff]  }
  0xae   :  { %714 = vmatpush3.bf16.msra.mxu0 %v807_v3  ;;  %734 = vmatpush3.bf16.msra.mxu1 %v816_v8  ;;  %v646_v42 = vld [vmem:[#allocation10] ss:$0 sm:$0xff]  ;;  %v836_v52 = vld [vmem:[#allocation14 + $0x30] sm:$0xff]   ;;  %v655_v54 = vld [vmem:[#allocation13] ss:$0 sm:$0xff] }
  0xaf   :  { %715 = vmatprep.subr.bf16.mxu0 %v1081_v0  ;;  %735 = vmatprep.subr.bf16.mxu1 %v1081_v0  ;;  %v837_v53 = vld [vmem:[#allocation14 + $0x38] sm:$0xff]   ;;  %v664_v1 = vld [vmem:[#allocation16] ss:$0 sm:$0xff] }
  0xb2   :  { %716 = vmatpush3.bf16.msra.mxu0 %v808_v5  ;;  %736 = vmatpush3.bf16.msra.mxu1 %v817_v10 }
  0xb3   :  { %717 = vmatprep.subr.bf16.mxu0 %v1081_v0  ;;  %737 = vmatprep.subr.bf16.mxu1 %v1081_v0 }
  0xb6   :  { %718 = vmatpush3.bf16.msra.mxu0 %v809_v7  ;;  %738 = vmatpush3.bf16.msra.mxu1 %v818_v12 }
  0xb7   :  { %719 = vmatprep.subr.bf16.mxu0 %v1081_v0  ;;  %739 = vmatprep.subr.bf16.mxu1 %v1081_v0 }
  0xba   :  { %720 = vmatpush3.bf16.msra.mxu0 %v810_v9  ;;  %740 = vmatpush3.bf16.msra.mxu1 %v819_v14 }
  0xbb   :  { %721 = vmatprep.subr.bf16.mxu0 %v1081_v0  ;;  %741 = vmatprep.subr.bf16.mxu1 %v1081_v0 }
  0xbe   :  { %722 = vmatpush3.bf16.msra.mxu0 %v811_v11  ;;  %742 = vmatpush3.bf16.msra.mxu1 %v820_v16 }
  0xbf   :  { %723 = vmatprep.subr.bf16.mxu0 %v1081_v0  ;;  %743 = vmatprep.subr.bf16.mxu1 %v1081_v0 }
  0xc2   :  { %724 = vmatpush3.bf16.msra.mxu0 %v812_v13  ;;  %744 = vmatpush3.bf16.msra.mxu1 %v821_v17 }
  0xc3   :  { %749 = vmatprep.subr.bf16.mxu0 %v1081_v0  ;;  %769 = vmatprep.subr.bf16.mxu1 %v1081_v0 }
  0xc5   :  { %726 = vmatmul.mubr.bf16.vlgmr.msra.gmra.mrb[0].mxu0 %v813_v15 }
  0xc6   :  { %765 = vmatprep.mubr.msk.bf16.mxu0 %vm1082_vm0, %v1081_v0  ;;  %750 = vmatpush3.bf16.msra.mxu0 %v822_v18 }
  0xc7   :  { %751 = vmatprep.subr.bf16.mxu0 %v1081_v0 }
  0xca   :  { %752 = vmatpush3.bf16.msra.mxu0 %v823_v19 }
  0xcb   :  { %753 = vmatprep.subr.bf16.mxu0 %v1081_v0 }
  0xce   :  { %754 = vmatpush3.bf16.msra.mxu0 %v824_v20 }
  0xcf   :  { %755 = vmatprep.subr.bf16.mxu0 %v1081_v0 }
  0xd2   :  { %756 = vmatpush3.bf16.msra.mxu0 %v825_v21 }
  0xd3   :  { %757 = vmatprep.subr.bf16.mxu0 %v1081_v0 }
  0xd6   :  { %758 = vmatpush3.bf16.msra.mxu0 %v826_v22 }
  0xd7   :  { %759 = vmatprep.subr.bf16.mxu0 %v1081_v0 }
  0xda   :  { %760 = vmatpush3.bf16.msra.mxu0 %v827_v23 }
  0xdb   :  { %761 = vmatprep.subr.bf16.mxu0 %v1081_v0 }
  0xde   :  { %762 = vmatpush3.bf16.msra.mxu0 %v828_v34 }
  0xdf   :  { %763 = vmatprep.subr.bf16.mxu0 %v1081_v0 }
  0xe2   :  { %764 = vmatpush3.bf16.msra.mxu0 %v829_v35 }
 0x198   :  { %v261_v25 = vpop.f32.mrb[0].mxu0 }
 0x199   :  { %v262_v26 = vadd.f32 %v636_v24, %v261_v25  ;;  %v727_v27 = vpop.f32.mrb[1].mxu0 }
 0x19a   :  { %v264_v28 = vpop.f32.mrb[2].mxu0 }
 0x19b   :  { %v265_v29 = vadd.f32 %v636_v24, %v264_v28  ;;  %v728_v30 = vpop.f32.mrb[3].mxu0  ;;  %v268_v31 = vmax.f32 %v262_v26, 0.0 }
 0x19d   :  { %v269_v32 = vmax.f32 %v265_v29, 0.0 }
 0x19f   :  { %v270_v33 = vpack.c.bf16 %v269_v32, %v268_v31 }
 0x1a1   :  { %746 = vmatmul.mubr.bf16.vlgmr.msra.gmra.mrb[0].mxu1 %v270_v33 }
 0x1a2   :  { %785 = vmatprep.mubr.msk.bf16.mxu1 %vm1082_vm0, %v1081_v0  ;;  %770 = vmatpush3.bf16.msra.mxu1 %v830_v36 }
 0x1a3   :  { %771 = vmatprep.subr.bf16.mxu1 %v1081_v0 }
 0x1a6   :  { %772 = vmatpush3.bf16.msra.mxu1 %v831_v37 }
 0x1a7   :  { %773 = vmatprep.subr.bf16.mxu1 %v1081_v0 }
 0x1aa   :  { %774 = vmatpush3.bf16.msra.mxu1 %v832_v38 }
 0x1ab   :  { %775 = vmatprep.subr.bf16.mxu1 %v1081_v0 }
 0x1ae   :  { %776 = vmatpush3.bf16.msra.mxu1 %v833_v39 }
 0x1af   :  { %777 = vmatprep.subr.bf16.mxu1 %v1081_v0 }
 0x1b2   :  { %778 = vmatpush3.bf16.msra.mxu1 %v834_v40 }
 0x1b3   :  { %779 = vmatprep.subr.bf16.mxu1 %v1081_v0 }
 0x1b6   :  { %780 = vmatpush3.bf16.msra.mxu1 %v835_v41 }
 0x1b7   :  { %781 = vmatprep.subr.bf16.mxu1 %v1081_v0 }
 0x1ba   :  { %782 = vmatpush3.bf16.msra.mxu1 %v836_v52 }
 0x1bb   :  { %783 = vmatprep.subr.bf16.mxu1 %v1081_v0 }
 0x1be   :  { %784 = vmatpush3.bf16.msra.mxu1 %v837_v53 }
 0x274   :  { %v376_v43 = vpop.f32.mrb[0].mxu1 }
 0x275   :  { %v377_v44 = vadd.f32 %v646_v42, %v376_v43  ;;  %v747_v45 = vpop.f32.mrb[1].mxu1 }
 0x276   :  { %v379_v46 = vpop.f32.mrb[2].mxu1 }
 0x277   :  { %v380_v47 = vadd.f32 %v646_v42, %v379_v46  ;;  %v748_v48 = vpop.f32.mrb[3].mxu1  ;;  %v383_v49 = vmax.f32 %v377_v44, 0.0 }
 0x279   :  { %v384_v50 = vmax.f32 %v380_v47, 0.0 }
 0x27b   :  { %v385_v51 = vpack.c.bf16 %v384_v50, %v383_v49 }
 0x27d   :  { %766 = vmatmul.mubr.bf16.vlgmr.msra.gmra.mrb[4].mxu0 %v385_v51 }
 0x350   :  { %v491_v55 = vpop.f32.mrb[4].mxu0 }
 0x351   :  { %v492_v56 = vadd.f32 %v655_v54, %v491_v55  ;;  %v767_v57 = vpop.f32.mrb[5].mxu0 }
 0x352   :  { %v494_v58 = vpop.f32.mrb[6].mxu0 }
 0x353   :  { %v495_v59 = vadd.f32 %v655_v54, %v494_v58  ;;  %v768_v60 = vpop.f32.mrb[7].mxu0  ;;  %v498_v61 = vmax.f32 %v492_v56, 0.0 }
 0x355   :  { %v499_v62 = vmax.f32 %v495_v59, 0.0 }
 0x357   :  { %v500_v63 = vpack.c.bf16 %v499_v62, %v498_v61 }
 0x359   :  { %786 = vmatmul.mubr.bf16.vlgmr.msra.gmra.mrb[4].mxu1 %v500_v63 }
 0x42c   :  { %v606_v2 = vpop.f32.mrb[4].mxu1 }
 0x42d   :  { %v607_v3 = vadd.f32 %v664_v1, %v606_v2  ;;  %v787_v4 = vpop.f32.mrb[5].mxu1 }
 0x42e   :  { %v609_v0 = vpop.f32.mrb[6].mxu1 }
 0x42f   :  { %613 = vst [vmem:[#allocation17] sm:$0xff] %v607_v3  ;;  %v610_v5 = vadd.f32 %v664_v1, %v609_v0  ;;  %v788_v6 = vpop.f32.mrb[7].mxu1 }
 0x431   :  { %614 = vst [vmem:[#allocation17 + $0x8] sm:$0xff] %v610_v5 }
 0x432   :  { %1047 = shalt.err (!%p1044_p6)
}
 0x433   :  { %s1048_s17 = scalar_lea.hbm %s1334_s9, 256 }
 0x434   :  { %p1049_p7 = scmp.ne.s32.totalorder %s1334_s9, %s1048_s17  ;;  %p1052_p8 = scmp.lt.u32.totalorder %s1048_s17, %s1334_s9 }
 0x436   :  { %p1054_p9 = pnand %p1052_p8, %p1049_p7 }
 0x438   :  { %1057 = shalt.err (!%p1054_p9)
}
 0x439   :  { %s1084_s13 = smov 128   ;;  %s1085_s1 = smov 8  }
 0x43a   :  { %626 = dma.vmem_to_hbm [thread:$0]  %s621_s27, 256, %s1334_s9, [#allocation4], %s1084_s13, %s1084_s13, %s1085_s1  }
 0x43b   :  { %1068 = dma.done.wait [#allocation4], 256  }
 0x43c   :  { %1069 = vsyncadd [#allocation4], 4294967040 }
 0x43d   :  { %630 = vsyncpa [#allocation3], 1 }
 0x43e   :  { %631 = vsyncpa [#allocation6], 1 }
 0x43f   :  { %632 = vsyncpa [#allocation9], 1 }
 0x440   :  { %633 = vsyncpa [#allocation12], 1 }
 0x441   :  { %634 = vsyncpa [#allocation15], 1 }
 0x442   :  { %635 = vsyncpa [#allocation4], 1 }

</bundles_post_ra>
